<compile_context>
chip_gen: v7x
topology: tpu7x:2x2x1
jax: 0.10.0
libtpu: 0.0.40
codegen_flags: <defaults>
</compile_context>

<pallas_src>
import functools

import jax
import jax.numpy as jnp
from jax.experimental import pallas as pl
from jax.experimental.pallas import tpu as pltpu

NEG_SLOPE = 0.02
PE_L = 10        # frequency bands in Trigonometric_kernel
LANE = 128


def _round_up(x, m):
    return ((x + m - 1) // m) * m


def pe_dim(d: int) -> int:
    return d + 2 * PE_L * d


# Trigonometric_kernel is not shown in the reference file; standard NeRF
# embedder [x, sin(2^i x), cos(2^i x)] for i in 0..L-1 (same layout used in the
# pure-JAX reference below, so the comparison is apples-to-apples).
def trig_encode(x):  # x: (N, pos_dim), f32
    freqs = 2.0 ** jnp.arange(PE_L, dtype=jnp.float32)            # (L,)
    xf = x[:, None, :] * freqs[None, :, None]                     # (N, L, d)
    enc = jnp.concatenate([jnp.sin(xf), jnp.cos(xf)], axis=-1)    # (N, L, 2d)
    return jnp.concatenate([x, enc.reshape(x.shape[0], -1)], axis=-1)


# ----------------------------------------------------------------------------
# Pallas kernel: 7 fused Linear layers, LeakyReLU(0.02) on layers 1..6.
# bf16 MXU inputs, f32 accumulation, bf16 bias/activation epilogue, narrow
# f32 output store (first out_dim lanes only).
# ----------------------------------------------------------------------------
def mlp_kernel(x_ref,
               w1, b1, w2, b2, w3, b3, w4, b4, w5, b5, w6, b6, w7, b7,
               o_ref):
    def hidden(h, w_ref, b_ref):
        # MXU matmul with f32 accumulation; epilogue (bias + LeakyReLU) in bf16.
        y = jnp.dot(h, w_ref[...], preferred_element_type=jnp.float32)
        y = y.astype(jnp.bfloat16) + b_ref[...]
        return jnp.maximum(y, NEG_SLOPE * y)     # LeakyReLU(0.02), exact, bf16

    h = x_ref[...]
    h = hidden(h, w1, b1)
    h = hidden(h, w2, b2)
    h = hidden(h, w3, b3)
    h = hidden(h, w4, b4)
    h = hidden(h, w5, b5)
    h = hidden(h, w6, b6)
    # Final layer: f32 bias + accumulation on the lane-padded weight, but only
    # the first out_dim lanes are stored (narrow output -> tiny HBM writeback).
    y = jnp.dot(h, w7[...], preferred_element_type=jnp.float32) + b7[...]
    o_ref[...] = y[:, :o_ref.shape[1]]


# ----------------------------------------------------------------------------
# One-time weight packing (hoisted out of the per-call forward).
# ----------------------------------------------------------------------------
def pack_params(params, din):
    """Pad layer-1 K to 128 lanes, pad layer-7 output to 128 lanes, cast
    weights (and biases of layers 1..6) to bf16, reshape biases to (1, n)."""
    din_p = _round_up(din, LANE)
    out_dim = params["w7"].shape[1]
    out_p = _round_up(out_dim, LANE)
    packed = []
    for k in range(1, 8):
        w = params[f"w{k}"].astype(jnp.float32)
        b = params[f"b{k}"].astype(jnp.float32).reshape(1, -1)
        if k == 1:
            w = jnp.pad(w, ((0, din_p - din), (0, 0)))          # zero K-pad rows
        if k == 7:
            w = jnp.pad(w, ((0, 0), (0, out_p - out_dim)))      # zero out-pad cols
            b = jnp.pad(b, ((0, 0), (0, out_p - out_dim)))
        w = w.astype(jnp.bfloat16)
        if k != 7:
            b = b.astype(jnp.bfloat16)                          # bf16 epilogue
        packed.extend([w, b])
    return tuple(packed)


# ----------------------------------------------------------------------------
# Jitted forward: the PE / concat / pad / bf16-cast producer fuses into one
# XLA pass feeding the Pallas kernel.
# ----------------------------------------------------------------------------
@functools.partial(jax.jit, static_argnames=("out_dim", "tm"))
def imae_decoder_forward(in_feat, packed, *, out_dim, tm=2048):
    """in_feat: (B, L, C) with C = 3 (xyz) + in_dim feature channels."""
    B, L, C = in_feat.shape
    x = in_feat.reshape(-1, C).astype(jnp.float32)
    pts = trig_encode(x[:, :3])
    x = jnp.concatenate([pts, x[:, 3:]], axis=-1)     # (N, Din), Din = 95 here
    N, Din = x.shape

    din_p = packed[0].shape[0]                        # padded layer-1 K (128)

    # Row tiling: big tile to amortize per-grid-step overhead, but cap so the
    # grid has >= 2 steps when possible (keeps both v7x TensorCores busy).
    tm = max(8, (tm // 8) * 8)
    half_rows = max(8, _round_up(pl.cdiv(N, 2), 8))
    tm_eff = min(tm, half_rows)
    n_pad = _round_up(N, tm_eff)                      # no rows silently dropped

    x = jnp.pad(x, ((0, n_pad - N), (0, din_p - Din))).astype(jnp.bfloat16)

    in_specs = [pl.BlockSpec((tm_eff, din_p), lambda i: (i, 0))]
    # Weights/biases: full block, constant index_map -> stay VMEM resident.
    for arr in packed:
        in_specs.append(pl.BlockSpec(arr.shape, lambda i: (0, 0)))

    out = pl.pallas_call(
        mlp_kernel,
        out_shape=jax.ShapeDtypeStruct((n_pad, out_dim), jnp.float32),
        grid_spec=pltpu.PrefetchScalarGridSpec(
            num_scalar_prefetch=0,
            grid=(n_pad // tm_eff,),
            in_specs=in_specs,
            out_specs=pl.BlockSpec((tm_eff, out_dim), lambda i: (i, 0)),
        ),
        compiler_params=pltpu.CompilerParams(
            dimension_semantics=("parallel",),
            vmem_limit_bytes=40 * 1024 * 1024),
    )(x, *packed)
    return out[:N].reshape(B, L, out_dim)


# ----------------------------------------------------------------------------
# Deterministic parameter init (matches nn.init.normal_ / constant_ semantics).
# Weights stored as (in, out) so the kernel computes h @ W (== x @ W.T in torch).
# ----------------------------------------------------------------------------
def init_params(key, in_dim, out_dim, pos_dim=3, gf_dim=32):
    pd = pe_dim(pos_dim)
    dims = [in_dim + pd,
            gf_dim * 8, gf_dim * 8, gf_dim * 8,
            gf_dim * 4, gf_dim * 2, gf_dim * 1,
            out_dim]
    keys = jax.random.split(key, 7)
    params = {}
    for i in range(7):
        mean = 1e-5 if i == 6 else 0.0
        w = mean + 0.02 * jax.random.normal(keys[i], (dims[i], dims[i + 1]),
                                            dtype=jnp.float32)
        params[f"w{i + 1}"] = w
        params[f"b{i + 1}"] = jnp.zeros((dims[i + 1],), jnp.float32)
    return params


# Pure-JAX (f32) reference of the same forward, for a correctness check.
def reference_forward(in_feat, params):
    B, L, C = in_feat.shape
    x = in_feat.reshape(-1, C)
    pts = trig_encode(x[:, :3])
    h = jnp.concatenate([pts, x[:, 3:]], axis=-1)
    for k in range(1, 8):
        h = h @ params[f"w{k}"] + params[f"b{k}"]
        if k < 7:
            h = jnp.where(h >= 0, h, NEG_SLOPE * h)
    return h.reshape(B, L, params["w7"].shape[1])


if __name__ == "__main__":
    key = jax.random.PRNGKey(0)
    k_in, k_par = jax.random.split(key)

    B, L = 2, 8
    in_dim = 32          # feature channels (module's in_dim)
    out_dim = 4
    C = 3 + in_dim       # first 3 channels are xyz fed to the pos encoder

    in_feat = jax.random.normal(k_in, (B, L, C), dtype=jnp.float32)
    params = init_params(k_par, in_dim, out_dim, pos_dim=3, gf_dim=32)

    packed = pack_params(params, in_dim + pe_dim(3))   # one-time packing
    out = imae_decoder_forward(in_feat, packed, out_dim=out_dim, tm=2048)
    out = jax.block_until_ready(out)

    ref = jax.block_until_ready(reference_forward(in_feat, params))
    assert out.shape == (B, L, out_dim)

    # bf16 matmul inputs / bf16 epilogue vs f32 reference: scaled max-abs error.
    rel_err = jnp.max(jnp.abs(out - ref)) / (jnp.max(jnp.abs(ref)) + 1e-12)
    assert float(rel_err) < 5e-2, f"mismatch vs reference: rel_err={float(rel_err)}"

    print("KERNEL_OK")
</pallas_src>

<mosaic_0001>
module attributes {stable_mosaic.version = 11 : i64} {
  func.func @mlp_kernel(%arg0: i32, %arg1: memref<8x128xbf16, #tpu.memory_space<vmem>>, %arg2: memref<128x256xbf16, #tpu.memory_space<vmem>>, %arg3: memref<1x256xbf16, #tpu.memory_space<vmem>>, %arg4: memref<256x256xbf16, #tpu.memory_space<vmem>>, %arg5: memref<1x256xbf16, #tpu.memory_space<vmem>>, %arg6: memref<256x256xbf16, #tpu.memory_space<vmem>>, %arg7: memref<1x256xbf16, #tpu.memory_space<vmem>>, %arg8: memref<256x128xbf16, #tpu.memory_space<vmem>>, %arg9: memref<1x128xbf16, #tpu.memory_space<vmem>>, %arg10: memref<128x64xbf16, #tpu.memory_space<vmem>>, %arg11: memref<1x64xbf16, #tpu.memory_space<vmem>>, %arg12: memref<64x32xbf16, #tpu.memory_space<vmem>>, %arg13: memref<1x32xbf16, #tpu.memory_space<vmem>>, %arg14: memref<32x128xbf16, #tpu.memory_space<vmem>>, %arg15: memref<1x128xf32, #tpu.memory_space<vmem>>, %arg16: memref<8x4xf32, #tpu.memory_space<vmem>>) attributes {dimension_semantics = [#tpu.dimension_semantics<parallel>], iteration_bounds = array<i64: 2>, scalar_prefetch = 0 : i64, scratch_operands = 0 : i64, tpu.core_type = #tpu.core_type<tc>, window_params = [{transform_indices = @transform_0, window_bounds = array<i64: 8, 128>}, {pipeline_mode = #tpu.pipeline_mode<synchronous>, transform_indices = @transform_1, window_bounds = array<i64: 128, 256>}, {pipeline_mode = #tpu.pipeline_mode<synchronous>, transform_indices = @transform_2, window_bounds = array<i64: 1, 256>}, {pipeline_mode = #tpu.pipeline_mode<synchronous>, transform_indices = @transform_3, window_bounds = array<i64: 256, 256>}, {pipeline_mode = #tpu.pipeline_mode<synchronous>, transform_indices = @transform_4, window_bounds = array<i64: 1, 256>}, {pipeline_mode = #tpu.pipeline_mode<synchronous>, transform_indices = @transform_5, window_bounds = array<i64: 256, 256>}, {pipeline_mode = #tpu.pipeline_mode<synchronous>, transform_indices = @transform_6, window_bounds = array<i64: 1, 256>}, {pipeline_mode = #tpu.pipeline_mode<synchronous>, transform_indices = @transform_7, window_bounds = array<i64: 256, 128>}, {pipeline_mode = #tpu.pipeline_mode<synchronous>, transform_indices = @transform_8, window_bounds = array<i64: 1, 128>}, {pipeline_mode = #tpu.pipeline_mode<synchronous>, transform_indices = @transform_9, window_bounds = array<i64: 128, 64>}, {pipeline_mode = #tpu.pipeline_mode<synchronous>, transform_indices = @transform_10, window_bounds = array<i64: 1, 64>}, {pipeline_mode = #tpu.pipeline_mode<synchronous>, transform_indices = @transform_11, window_bounds = array<i64: 64, 32>}, {pipeline_mode = #tpu.pipeline_mode<synchronous>, transform_indices = @transform_12, window_bounds = array<i64: 1, 32>}, {pipeline_mode = #tpu.pipeline_mode<synchronous>, transform_indices = @transform_13, window_bounds = array<i64: 32, 128>}, {pipeline_mode = #tpu.pipeline_mode<synchronous>, transform_indices = @transform_14, window_bounds = array<i64: 1, 128>}, {transform_indices = @transform_15, window_bounds = array<i64: 8, 4>}]} {
    %c0 = arith.constant 0 : index
    %c0_0 = arith.constant 0 : index
    %0 = vector.load %arg1[%c0, %c0_0] : memref<8x128xbf16, #tpu.memory_space<vmem>>, vector<8x128xbf16>
    %c0_1 = arith.constant 0 : index
    %c0_2 = arith.constant 0 : index
    %1 = vector.load %arg2[%c0_1, %c0_2] : memref<128x256xbf16, #tpu.memory_space<vmem>>, vector<128x256xbf16>
    %cst = arith.constant dense<0.000000e+00> : vector<8x256xf32>
    %2 = tpu.matmul %0, %1, %cst {dimension_numbers = #tpu.dot_dimension_numbers<[1], [0], [0], [1], [0, 0, 1, 1], [], []>} : vector<8x128xbf16>, vector<128x256xbf16>, vector<8x256xf32> -> vector<8x256xf32>
    %3 = arith.truncf %2 : vector<8x256xf32> to vector<8x256xbf16>
    %c0_3 = arith.constant 0 : index
    %c0_4 = arith.constant 0 : index
    %4 = vector.load %arg3[%c0_3, %c0_4] : memref<1x256xbf16, #tpu.memory_space<vmem>>, vector<1x256xbf16>
    %5 = vector.broadcast %4 : vector<1x256xbf16> to vector<8x256xbf16>
    %6 = arith.addf %3, %5 : vector<8x256xbf16>
    %cst_5 = arith.constant 2.001950e-02 : bf16
    %7 = vector.broadcast %cst_5 : bf16 to vector<8x256xbf16>
    %8 = arith.mulf %7, %6 : vector<8x256xbf16>
    %9 = arith.maximumf %6, %8 : vector<8x256xbf16>
    %c0_6 = arith.constant 0 : index
    %c0_7 = arith.constant 0 : index
    %10 = vector.load %arg4[%c0_6, %c0_7] : memref<256x256xbf16, #tpu.memory_space<vmem>>, vector<256x256xbf16>
    %cst_8 = arith.constant dense<0.000000e+00> : vector<8x256xf32>
    %11 = tpu.matmul %9, %10, %cst_8 {dimension_numbers = #tpu.dot_dimension_numbers<[1], [0], [0], [1], [0, 0, 1, 1], [], []>} : vector<8x256xbf16>, vector<256x256xbf16>, vector<8x256xf32> -> vector<8x256xf32>
    %12 = arith.truncf %11 : vector<8x256xf32> to vector<8x256xbf16>
    %c0_9 = arith.constant 0 : index
    %c0_10 = arith.constant 0 : index
    %13 = vector.load %arg5[%c0_9, %c0_10] : memref<1x256xbf16, #tpu.memory_space<vmem>>, vector<1x256xbf16>
    %14 = vector.broadcast %13 : vector<1x256xbf16> to vector<8x256xbf16>
    %15 = arith.addf %12, %14 : vector<8x256xbf16>
    %cst_11 = arith.constant 2.001950e-02 : bf16
    %16 = vector.broadcast %cst_11 : bf16 to vector<8x256xbf16>
    %17 = arith.mulf %16, %15 : vector<8x256xbf16>
    %18 = arith.maximumf %15, %17 : vector<8x256xbf16>
    %c0_12 = arith.constant 0 : index
    %c0_13 = arith.constant 0 : index
    %19 = vector.load %arg6[%c0_12, %c0_13] : memref<256x256xbf16, #tpu.memory_space<vmem>>, vector<256x256xbf16>
    %cst_14 = arith.constant dense<0.000000e+00> : vector<8x256xf32>
    %20 = tpu.matmul %18, %19, %cst_14 {dimension_numbers = #tpu.dot_dimension_numbers<[1], [0], [0], [1], [0, 0, 1, 1], [], []>} : vector<8x256xbf16>, vector<256x256xbf16>, vector<8x256xf32> -> vector<8x256xf32>
    %21 = arith.truncf %20 : vector<8x256xf32> to vector<8x256xbf16>
    %c0_15 = arith.constant 0 : index
    %c0_16 = arith.constant 0 : index
    %22 = vector.load %arg7[%c0_15, %c0_16] : memref<1x256xbf16, #tpu.memory_space<vmem>>, vector<1x256xbf16>
    %23 = vector.broadcast %22 : vector<1x256xbf16> to vector<8x256xbf16>
    %24 = arith.addf %21, %23 : vector<8x256xbf16>
    %cst_17 = arith.constant 2.001950e-02 : bf16
    %25 = vector.broadcast %cst_17 : bf16 to vector<8x256xbf16>
    %26 = arith.mulf %25, %24 : vector<8x256xbf16>
    %27 = arith.maximumf %24, %26 : vector<8x256xbf16>
    %c0_18 = arith.constant 0 : index
    %c0_19 = arith.constant 0 : index
    %28 = vector.load %arg8[%c0_18, %c0_19] : memref<256x128xbf16, #tpu.memory_space<vmem>>, vector<256x128xbf16>
    %cst_20 = arith.constant dense<0.000000e+00> : vector<8x128xf32>
    %29 = tpu.matmul %27, %28, %cst_20 {dimension_numbers = #tpu.dot_dimension_numbers<[1], [0], [0], [1], [0, 0, 1, 1], [], []>} : vector<8x256xbf16>, vector<256x128xbf16>, vector<8x128xf32> -> vector<8x128xf32>
    %30 = arith.truncf %29 : vector<8x128xf32> to vector<8x128xbf16>
    %c0_21 = arith.constant 0 : index
    %c0_22 = arith.constant 0 : index
    %31 = vector.load %arg9[%c0_21, %c0_22] : memref<1x128xbf16, #tpu.memory_space<vmem>>, vector<1x128xbf16>
    %32 = vector.broadcast %31 : vector<1x128xbf16> to vector<8x128xbf16>
    %33 = arith.addf %30, %32 : vector<8x128xbf16>
    %cst_23 = arith.constant 2.001950e-02 : bf16
    %34 = vector.broadcast %cst_23 : bf16 to vector<8x128xbf16>
    %35 = arith.mulf %34, %33 : vector<8x128xbf16>
    %36 = arith.maximumf %33, %35 : vector<8x128xbf16>
    %c0_24 = arith.constant 0 : index
    %c0_25 = arith.constant 0 : index
    %37 = vector.load %arg10[%c0_24, %c0_25] : memref<128x64xbf16, #tpu.memory_space<vmem>>, vector<128x64xbf16>
    %cst_26 = arith.constant dense<0.000000e+00> : vector<8x64xf32>
    %38 = tpu.matmul %36, %37, %cst_26 {dimension_numbers = #tpu.dot_dimension_numbers<[1], [0], [0], [1], [0, 0, 1, 1], [], []>} : vector<8x128xbf16>, vector<128x64xbf16>, vector<8x64xf32> -> vector<8x64xf32>
    %39 = arith.truncf %38 : vector<8x64xf32> to vector<8x64xbf16>
    %c0_27 = arith.constant 0 : index
    %c0_28 = arith.constant 0 : index
    %40 = vector.load %arg11[%c0_27, %c0_28] : memref<1x64xbf16, #tpu.memory_space<vmem>>, vector<1x64xbf16>
    %41 = vector.broadcast %40 : vector<1x64xbf16> to vector<8x64xbf16>
    %42 = arith.addf %39, %41 : vector<8x64xbf16>
    %cst_29 = arith.constant 2.001950e-02 : bf16
    %43 = vector.broadcast %cst_29 : bf16 to vector<8x64xbf16>
    %44 = arith.mulf %43, %42 : vector<8x64xbf16>
    %45 = arith.maximumf %42, %44 : vector<8x64xbf16>
    %c0_30 = arith.constant 0 : index
    %c0_31 = arith.constant 0 : index
    %46 = vector.load %arg12[%c0_30, %c0_31] : memref<64x32xbf16, #tpu.memory_space<vmem>>, vector<64x32xbf16>
    %cst_32 = arith.constant dense<0.000000e+00> : vector<8x32xf32>
    %47 = tpu.matmul %45, %46, %cst_32 {dimension_numbers = #tpu.dot_dimension_numbers<[1], [0], [0], [1], [0, 0, 1, 1], [], []>} : vector<8x64xbf16>, vector<64x32xbf16>, vector<8x32xf32> -> vector<8x32xf32>
    %48 = arith.truncf %47 : vector<8x32xf32> to vector<8x32xbf16>
    %c0_33 = arith.constant 0 : index
    %c0_34 = arith.constant 0 : index
    %49 = vector.load %arg13[%c0_33, %c0_34] : memref<1x32xbf16, #tpu.memory_space<vmem>>, vector<1x32xbf16>
    %50 = vector.broadcast %49 : vector<1x32xbf16> to vector<8x32xbf16>
    %51 = arith.addf %48, %50 : vector<8x32xbf16>
    %cst_35 = arith.constant 2.001950e-02 : bf16
    %52 = vector.broadcast %cst_35 : bf16 to vector<8x32xbf16>
    %53 = arith.mulf %52, %51 : vector<8x32xbf16>
    %54 = arith.maximumf %51, %53 : vector<8x32xbf16>
    %c0_36 = arith.constant 0 : index
    %c0_37 = arith.constant 0 : index
    %55 = vector.load %arg14[%c0_36, %c0_37] : memref<32x128xbf16, #tpu.memory_space<vmem>>, vector<32x128xbf16>
    %cst_38 = arith.constant dense<0.000000e+00> : vector<8x128xf32>
    %56 = tpu.matmul %54, %55, %cst_38 {dimension_numbers = #tpu.dot_dimension_numbers<[1], [0], [0], [1], [0, 0, 1, 1], [], []>} : vector<8x32xbf16>, vector<32x128xbf16>, vector<8x128xf32> -> vector<8x128xf32>
    %c0_39 = arith.constant 0 : index
    %c0_40 = arith.constant 0 : index
    %57 = vector.load %arg15[%c0_39, %c0_40] : memref<1x128xf32, #tpu.memory_space<vmem>>, vector<1x128xf32>
    %58 = vector.broadcast %57 : vector<1x128xf32> to vector<8x128xf32>
    %59 = arith.addf %56, %58 : vector<8x128xf32>
    %60 = vector.extract_strided_slice %59 {offsets = [0, 0], sizes = [8, 4], strides = [1, 1]} : vector<8x128xf32> to vector<8x4xf32>
    %c0_41 = arith.constant 0 : index
    %c0_42 = arith.constant 0 : index
    %61 = vector.load %arg16[%c0_41, %c0_42] : memref<8x4xf32, #tpu.memory_space<vmem>>, vector<8x4xf32>
    tpu.vector_store %arg16[%c0_41, %c0_42], %60 {strides = array<i32>} : memref<8x4xf32, #tpu.memory_space<vmem>>, vector<8x4xf32>,
    return
  }
  func.func @transform_0(%arg0: i32) -> (i32, i32) {
    %c0_i32 = arith.constant 0 : i32
    %c0_i32_0 = arith.constant 0 : i32
    return %arg0, %c0_i32 : i32, i32
  }
  func.func @transform_1(%arg0: i32) -> (i32, i32) {
    %c0_i32 = arith.constant 0 : i32
    %c0_i32_0 = arith.constant 0 : i32
    %c0_i32_1 = arith.constant 0 : i32
    return %c0_i32, %c0_i32_0 : i32, i32
  }
  func.func @transform_2(%arg0: i32) -> (i32, i32) {
    %c0_i32 = arith.constant 0 : i32
    %c0_i32_0 = arith.constant 0 : i32
    %c0_i32_1 = arith.constant 0 : i32
    return %c0_i32, %c0_i32_0 : i32, i32
  }
  func.func @transform_3(%arg0: i32) -> (i32, i32) {
    %c0_i32 = arith.constant 0 : i32
    %c0_i32_0 = arith.constant 0 : i32
    %c0_i32_1 = arith.constant 0 : i32
    return %c0_i32, %c0_i32_0 : i32, i32
  }
  func.func @transform_4(%arg0: i32) -> (i32, i32) {
    %c0_i32 = arith.constant 0 : i32
    %c0_i32_0 = arith.constant 0 : i32
    %c0_i32_1 = arith.constant 0 : i32
    return %c0_i32, %c0_i32_0 : i32, i32
  }
  func.func @transform_5(%arg0: i32) -> (i32, i32) {
    %c0_i32 = arith.constant 0 : i32
    %c0_i32_0 = arith.constant 0 : i32
    %c0_i32_1 = arith.constant 0 : i32
    return %c0_i32, %c0_i32_0 : i32, i32
  }
  func.func @transform_6(%arg0: i32) -> (i32, i32) {
    %c0_i32 = arith.constant 0 : i32
    %c0_i32_0 = arith.constant 0 : i32
    %c0_i32_1 = arith.constant 0 : i32
    return %c0_i32, %c0_i32_0 : i32, i32
  }
  func.func @transform_7(%arg0: i32) -> (i32, i32) {
    %c0_i32 = arith.constant 0 : i32
    %c0_i32_0 = arith.constant 0 : i32
    %c0_i32_1 = arith.constant 0 : i32
    return %c0_i32, %c0_i32_0 : i32, i32
  }
  func.func @transform_8(%arg0: i32) -> (i32, i32) {
    %c0_i32 = arith.constant 0 : i32
    %c0_i32_0 = arith.constant 0 : i32
    %c0_i32_1 = arith.constant 0 : i32
    return %c0_i32, %c0_i32_0 : i32, i32
  }
  func.func @transform_9(%arg0: i32) -> (i32, i32) {
    %c0_i32 = arith.constant 0 : i32
    %c0_i32_0 = arith.constant 0 : i32
    %c0_i32_1 = arith.constant 0 : i32
    return %c0_i32, %c0_i32_0 : i32, i32
  }
  func.func @transform_10(%arg0: i32) -> (i32, i32) {
    %c0_i32 = arith.constant 0 : i32
    %c0_i32_0 = arith.constant 0 : i32
    %c0_i32_1 = arith.constant 0 : i32
    return %c0_i32, %c0_i32_0 : i32, i32
  }
  func.func @transform_11(%arg0: i32) -> (i32, i32) {
    %c0_i32 = arith.constant 0 : i32
    %c0_i32_0 = arith.constant 0 : i32
    %c0_i32_1 = arith.constant 0 : i32
    return %c0_i32, %c0_i32_0 : i32, i32
  }
  func.func @transform_12(%arg0: i32) -> (i32, i32) {
    %c0_i32 = arith.constant 0 : i32
    %c0_i32_0 = arith.constant 0 : i32
    %c0_i32_1 = arith.constant 0 : i32
    return %c0_i32, %c0_i32_0 : i32, i32
  }
  func.func @transform_13(%arg0: i32) -> (i32, i32) {
    %c0_i32 = arith.constant 0 : i32
    %c0_i32_0 = arith.constant 0 : i32
    %c0_i32_1 = arith.constant 0 : i32
    return %c0_i32, %c0_i32_0 : i32, i32
  }
  func.func @transform_14(%arg0: i32) -> (i32, i32) {
    %c0_i32 = arith.constant 0 : i32
    %c0_i32_0 = arith.constant 0 : i32
    %c0_i32_1 = arith.constant 0 : i32
    return %c0_i32, %c0_i32_0 : i32, i32
  }
  func.func @transform_15(%arg0: i32) -> (i32, i32) {
    %c0_i32 = arith.constant 0 : i32
    %c0_i32_0 = arith.constant 0 : i32
    return %arg0, %c0_i32 : i32, i32
  }
}

</mosaic_0001>

<bundles_post_ra>
// kernel: imae_decoder_forward.1
= control target key start
LH: loop header
LB: loop body
LE: loop exit
PB: predicated region body
PF: predicated region fallthrough
CT: control target
= control target key end

     0   :  { %s2692_s0 = inlined_call_operand.vmem [shape: bf16[16,128], index: 0, kind: input, shape index: {}]   ;;  %s2693_s1 = inlined_call_operand.vmem [shape: bf16[128,256], index: 1, kind: input, shape index: {}]   ;;  %s2694_s2 = inlined_call_operand.vmem [shape: bf16[1,256], index: 2, kind: input, shape index: {}]   ;;  %s2695_s3 = inlined_call_operand.vmem [shape: bf16[256,256], index: 3, kind: input, shape index: {}]   ;;  %s2696_s4 = inlined_call_operand.vmem [shape: bf16[1,256], index: 4, kind: input, shape index: {}]   ;;  %s2697_s5 = inlined_call_operand.hbm [shape: bf16[256,256], index: 5, kind: input, shape index: {}]   ;;  %s2698_s6 = inlined_call_operand.vmem [shape: bf16[1,256], index: 6, kind: input, shape index: {}]   ;;  %s2699_s7 = inlined_call_operand.hbm [shape: bf16[256,128], index: 7, kind: input, shape index: {}]   ;;  %s2700_s8 = inlined_call_operand.vmem [shape: bf16[1,128], index: 8, kind: input, shape index: {}]   ;;  %s2701_s9 = inlined_call_operand.vmem [shape: bf16[128,64], index: 9, kind: input, shape index: {}]   ;;  %s2702_s10 = inlined_call_operand.vmem [shape: bf16[1,64], index: 10, kind: input, shape index: {}]   ;;  %s2703_s11 = inlined_call_operand.vmem [shape: bf16[64,32], index: 11, kind: input, shape index: {}]   ;;  %s2704_s12 = inlined_call_operand.vmem [shape: bf16[1,32], index: 12, kind: input, shape index: {}]   ;;  %s2705_s13 = inlined_call_operand.vmem [shape: bf16[32,128], index: 13, kind: input, shape index: {}]   ;;  %s2706_s14 = inlined_call_operand.vmem [shape: f32[1,128], index: 14, kind: input, shape index: {}]   ;;  %s2707_s15 = inlined_call_operand.vmem [shape: f32[16,4], index: 15, kind: output, shape index: {}]  }
   0x1   :  { %2711 = sst [smem:[#allocation9_spill]] %s2707_s15 }
   0x2   :  { %20 = vsyncpa [#allocation3], 0 }
   0x3   :  { %21 = vsyncpa [#allocation5], 0  ;;  %s2349_s18 = smov 0  }
   0x4 LB: > { %2712 = sst [smem:[#allocation8_spill]] %s2257_s18  ;;  %s2259_s19 = smov [#allocation2]   ;;  %s2257_s18 = sphi %s2349_s18, %s27_s18  }
   0x5   : > { %s402_s20 = sshll.u32 %s2259_s19, 4  ;;  %s2355_s21 = sadd.s32 4294967295, %s2257_s18   ;;  %s403_s20 = int_to_ptr.vmem [resolvable:$true] %s402_s20 }
   0x6   : > { %p1794_p0 = scmp.ge.s32.totalorder %s2257_s18, 1  ;;  %p378_p1 = scmp.lt.s32.totalorder %s2257_s18, 3 }
   0x7   : > { %p2708_p3 = scmp.eq.s32.totalorder %s2355_s21, 0  ;;  %s2260_s23 = smov [#allocation4]  }
   0x8   : > { %p2359_p2 = pnand %p1794_p0, %p378_p1  ;;  %s418_s24 = sshll.u32 %s2260_s23, 4  ;;  %s2372_s24 = int_to_ptr.vmem [resolvable:$true] %s418_s24 }
   0x9   : > { %s2187_s28 = scalar_lea.hbm %s2697_s5, 4096 }
   0xa   : > { %s2713_s22 = scalar_select %p2359_p2, 1, 0 }
   0xb   : > { %p2008_p4 = pneg %p2359_p2  ;;  %p2188_p6 = scmp.ne.s32.totalorder %s2697_s5, %s2187_s28 }
   0xc   : > { %p2194_p10 = scmp.lt.u32.totalorder %s2187_s28, %s2697_s5 }
   0xd   : > { %p2368_p5 = pnand %p2708_p3, %p2008_p4 }
   0xf   : > { %p2189_p7 = pneg %p2368_p5 }
  0x11   : > { %p2190_p8 = pnand %p2189_p7, %p2188_p6 }
  0x13   : > { %p2191_p9 = pneg %p2190_p8 }
  0x15   : > { %p2196_p11 = pnand %p2194_p10, %p2191_p9 }
  0x17   : > { %2199 = shalt.err (!%p2196_p11)
}
  0x18   : > { %s2200_s19 = scalar_lea.vmem %s403_s20, 4096  ;;  %p2208_p1 = scmp.lt.s32.totalorder %s403_s20, %s403_s20 }
  0x19   : > { %p2201_p12 = scmp.ne.s32.totalorder %s403_s20, %s2200_s19  ;;  %p2209_p4 = scmp.lt.s32.totalorder %s2200_s19, %s2200_s19 }
  0x1b   : > { %p2203_p13 = pnand %p2201_p12, %p2189_p7  ;;  %p2210_p3 = por %p2209_p4, %p2208_p1 }
  0x1d   : > { %p2204_p0 = pneg %p2203_p13 }
  0x1f   : > { %p2211_p2 = pnand %p2210_p3, %p2204_p0 }
  0x21   : > { %2214 = shalt.err (!%p2211_p2)
}
  0x22   : > { %s2261_s23 = smov 128   ;;  %s2262_s26 = smov 8  }
  0x23   : > { %2011 = dma.hbm_to_vmem [thread:$0]  (!%p2368_p5), %s2697_s5, 4096, %s403_s20, [#allocation3], %s2261_s23, %s2261_s23, %s2262_s26  }
  0x24   : > { %s2215_s16 = scalar_lea.hbm %s2699_s7, 2048 }
  0x25   : > { %p2216_p6 = scmp.ne.s32.totalorder %s2699_s7, %s2215_s16  ;;  %p2222_p8 = scmp.lt.u32.totalorder %s2215_s16, %s2699_s7 }
  0x27   : > { %p2218_p2 = pnand %p2216_p6, %p2189_p7 }
  0x29   : > { %p2219_p3 = pneg %p2218_p2 }
  0x2b   : > { %p2224_p9 = pnand %p2222_p8, %p2219_p3 }
  0x2d   : > { %2227 = shalt.err (!%p2224_p9)
}
  0x2e   : > { %s2228_s20 = scalar_lea.vmem %s2372_s24, 2048  ;;  %p2236_p13 = scmp.lt.s32.totalorder %s2372_s24, %s2372_s24 }
  0x2f   : > { %p2229_p10 = scmp.ne.s32.totalorder %s2372_s24, %s2228_s20  ;;  %p2237_p0 = scmp.lt.s32.totalorder %s2228_s20, %s2228_s20 }
  0x31   : > { %p2231_p11 = pnand %p2229_p10, %p2189_p7  ;;  %p2238_p1 = por %p2237_p0, %p2236_p13 }
  0x33   : > { %p2232_p12 = pneg %p2231_p11 }
  0x35   : > { %p2239_p4 = pnand %p2238_p1, %p2232_p12 }
  0x37   : > { %2242 = shalt.err (!%p2239_p4)
}
  0x38   : > { %s2263_s15 = smov 64   ;;  %s2264_s18 = smov 4  }
  0x39   : > { %2014 = dma.hbm_to_vmem [thread:$0]  (!%p2368_p5), %s2699_s7, 2048, %s2372_s24, [#allocation5], %s2263_s15, %s2263_s15, %s2264_s18  }
  0x3a   : > { %p2715_p6 = scmp.ne.s32.totalorder %s2713_s22, 0 }
  0x3b   : > { %p2716_p7 = scmp.eq.s32.totalorder (!%p2715_p6), %s2355_s21, 0 }
  0x3c   : > { %462 = sbr.rel (%p2715_p6) target bundleno = 1649 (0x671), region = 80 }
  0x43   : > { %2248 = dma.done.wait (%p2716_p7), [#allocation3], 4096   ;;  %p2717_p2 = pmov %p2716_p7 }
  0x45   : > { %2250 = vsyncadd (%p2717_p2), [#allocation3], 4294963200  ;;  %p2718_p3 = pmov %p2717_p2 }
  0x46   : > { %p2719_p8 = pmov %p2717_p2 }
  0x47   : > { %2252 = dma.done.wait (%p2718_p3), [#allocation5], 2048  }
  0x48   : > { %2254 = vsyncadd (%p2719_p8), [#allocation5], 4294965248  ;;  %v2265_v0 = vmov 0   ;;  %v2037_v1 = vld [vmem:[%s2693_s1 + $0x4] ss:$8 sps:$4 sm:$0xff]   ;;  %p512_p5 = scmp.lt.s32.totalorder %s2355_s21, 1 }
  0x49   : > { %651 = vmatprep.mubr.bf16.mxu0 %v2265_v0  ;;  %v2039_v2 = vld [vmem:[%s2693_s1] ss:$8 sps:$4 sm:$0xff]   ;;  %619 = vmatprep.subr.bf16.mxu0 %v2037_v1  ;;  %v2040_v3 = vld [vmem:[%s2693_s1 + $0x14] ss:$8 sps:$4 sm:$0xff]   ;;  %v2042_v4 = vld [vmem:[%s2693_s1 + $0x10] ss:$8 sps:$4 sm:$0xff]  }
  0x4a   : > { %620 = vmatpush1.bf16.msra.mxu0 %v2039_v2  ;;  %v2043_v5 = vld [vmem:[%s2693_s1 + $0x24] ss:$8 sps:$4 sm:$0xff]   ;;  %v2045_v6 = vld [vmem:[%s2693_s1 + $0x20] ss:$8 sps:$4 sm:$0xff]   ;;  %v2046_v7 = vld [vmem:[%s2693_s1 + $0x34] ss:$8 sps:$4 sm:$0xff]  }
  0x4b   : > { %621 = vmatprep.subr.bf16.mxu0 %v2040_v3  ;;  %v2048_v8 = vld [vmem:[%s2693_s1 + $0x30] ss:$8 sps:$4 sm:$0xff]   ;;  %v2049_v9 = vld [vmem:[%s2693_s1 + $0x44] ss:$8 sps:$4 sm:$0xff]   ;;  %v2063_v11 = vld [vmem:[%s2695_s3] ss:$8 sps:$4 sm:$0xff]  }
  0x4c   : > { %v2061_v10 = vld [vmem:[%s2695_s3 + $0x4] ss:$8 sps:$4 sm:$0xff]   ;;  %v2064_v12 = vld [vmem:[%s2695_s3 + $0x14] ss:$8 sps:$4 sm:$0xff]   ;;  %v2051_v13 = vld [vmem:[%s2693_s1 + $0x40] ss:$8 sps:$4 sm:$0xff]  }
  0x4d   : > { %898 = vmatprep.subr.bf16.mxu1 %v2061_v10  ;;  %v2066_v14 = vld [vmem:[%s2695_s3 + $0x10] ss:$8 sps:$4 sm:$0xff]   ;;  %v2067_v15 = vld [vmem:[%s2695_s3 + $0x24] ss:$8 sps:$4 sm:$0xff]   ;;  %v2052_v16 = vld [vmem:[%s2693_s1 + $0x54] ss:$8 sps:$4 sm:$0xff]  }
  0x4e   : > { %622 = vmatpush1.bf16.msra.mxu0 %v2042_v4  ;;  %899 = vmatpush1.bf16.msra.mxu1 %v2063_v11  ;;  %v2054_v17 = vld [vmem:[%s2693_s1 + $0x50] ss:$8 sps:$4 sm:$0xff]   ;;  %v2069_v18 = vld [vmem:[%s2695_s3 + $0x20] ss:$8 sps:$4 sm:$0xff]   ;;  %s2723_s21 = smov (!%p512_p5, %s2355_s21), 1  ;;  %vm2268_vm0 = vmmov 0  }
  0x4f   : > { %623 = vmatprep.subr.bf16.mxu0 %v2043_v5  ;;  %900 = vmatprep.subr.bf16.mxu1 %v2064_v12  ;;  %v2070_v19 = vld [vmem:[%s2695_s3 + $0x34] ss:$8 sps:$4 sm:$0xff]   ;;  %v2055_v20 = vld [vmem:[%s2693_s1 + $0x64] ss:$8 sps:$4 sm:$0xff]   ;;  %v2057_v21 = vld [vmem:[%s2693_s1 + $0x60] ss:$8 sps:$4 sm:$0xff]  }
  0x50   : > { %v2072_v22 = vld [vmem:[%s2695_s3 + $0x30] ss:$8 sps:$4 sm:$0xff]   ;;  %s1801_s26 = sshll.u32 %s2723_s21, 2  ;;  %v2073_v23 = vld [vmem:[%s2695_s3 + $0x44] ss:$8 sps:$4 sm:$0xff]   ;;  %vm1592_vm1 = vcmask 523264  }
  0x51   : > { %v2058_v24 = vld [vmem:[%s2693_s1 + $0x74] ss:$8 sps:$4 sm:$0xff]   ;;  %v2060_v25 = vld [vmem:[%s2693_s1 + $0x70] ss:$8 sps:$4 sm:$0xff]   ;;  %s515_s17 = scalar_lea.vmem %s2692_s0, %s1801_s26  ;;  %v2075_v26 = vld [vmem:[%s2695_s3 + $0x40] ss:$8 sps:$4 sm:$0xff]  }
  0x52   : > { %624 = vmatpush1.bf16.msra.mxu0 %v2045_v6  ;;  %901 = vmatpush1.bf16.msra.mxu1 %v2066_v14  ;;  %v2076_v27 = vld [vmem:[%s2695_s3 + $0x54] ss:$8 sps:$4 sm:$0xff]   ;;  %v2078_v28 = vld [vmem:[%s2695_s3 + $0x50] ss:$8 sps:$4 sm:$0xff]   ;;  %v522_v29 = vld [vmem:[%s515_s17] sm:$0xf] }
  0x53   : > { %625 = vmatprep.subr.bf16.mxu0 %v2046_v7  ;;  %902 = vmatprep.subr.bf16.mxu1 %v2067_v15  ;;  %v2079_v30 = vld [vmem:[%s2695_s3 + $0x64] ss:$8 sps:$4 sm:$0xff]   ;;  %v2081_v31 = vld [vmem:[%s2695_s3 + $0x60] ss:$8 sps:$4 sm:$0xff]   ;;  %v2082_v32 = vld [vmem:[%s2695_s3 + $0x74] ss:$8 sps:$4 sm:$0xff]  }
  0x54   : > { %v2084_v33 = vld [vmem:[%s2695_s3 + $0x70] ss:$8 sps:$4 sm:$0xff]   ;;  %v2085_v34 = vld [vmem:[%s2695_s3 + $0x84] ss:$8 sps:$4 sm:$0xff]   ;;  %v2087_v35 = vld [vmem:[%s2695_s3 + $0x80] ss:$8 sps:$4 sm:$0xff]  }
  0x55   : > { %v2088_v36 = vld [vmem:[%s2695_s3 + $0x94] ss:$8 sps:$4 sm:$0xff]   ;;  %v2090_v37 = vld [vmem:[%s2695_s3 + $0x90] ss:$8 sps:$4 sm:$0xff]   ;;  %v2091_v38 = vld [vmem:[%s2695_s3 + $0xa4] ss:$8 sps:$4 sm:$0xff]  }
  0x56   : > { %626 = vmatpush1.bf16.msra.mxu0 %v2048_v8  ;;  %903 = vmatpush1.bf16.msra.mxu1 %v2069_v18  ;;  %v2093_v39 = vld [vmem:[%s2695_s3 + $0xa0] ss:$8 sps:$4 sm:$0xff]   ;;  %v2094_v40 = vld [vmem:[%s2695_s3 + $0xb4] ss:$8 sps:$4 sm:$0xff]   ;;  %v2096_v41 = vld [vmem:[%s2695_s3 + $0xb0] ss:$8 sps:$4 sm:$0xff]  }
  0x57   : > { %627 = vmatprep.subr.bf16.mxu0 %v2049_v9  ;;  %904 = vmatprep.subr.bf16.mxu1 %v2070_v19  ;;  %v2097_v42 = vld [vmem:[%s2695_s3 + $0xc4] ss:$8 sps:$4 sm:$0xff]   ;;  %v2099_v43 = vld [vmem:[%s2695_s3 + $0xc0] ss:$8 sps:$4 sm:$0xff]   ;;  %v2100_v44 = vld [vmem:[%s2695_s3 + $0xd4] ss:$8 sps:$4 sm:$0xff]  }
  0x58   : > { %v2102_v45 = vld [vmem:[%s2695_s3 + $0xd0] ss:$8 sps:$4 sm:$0xff]   ;;  %v2103_v46 = vld [vmem:[%s2695_s3 + $0xe4] ss:$8 sps:$4 sm:$0xff]   ;;  %v2105_v47 = vld [vmem:[%s2695_s3 + $0xe0] ss:$8 sps:$4 sm:$0xff]  }
  0x59   : > { %v2106_v48 = vld [vmem:[%s2695_s3 + $0xf4] ss:$8 sps:$4 sm:$0xff]   ;;  %v2108_v49 = vld [vmem:[%s2695_s3 + $0xf0] ss:$8 sps:$4 sm:$0xff]   ;;  %v2109_v50 = vld [vmem:[#allocation2] ss:$8 sps:$4 sm:$0xff]  }
  0x5a   : > { %628 = vmatpush1.bf16.msra.mxu0 %v2051_v13  ;;  %905 = vmatpush1.bf16.msra.mxu1 %v2072_v22  ;;  %v2111_v51 = vld [vmem:[#allocation2 + $0x4] ss:$8 sps:$4 sm:$0xff]   ;;  %v2114_v52 = vld [vmem:[#allocation2 + $0x14] ss:$8 sps:$4 sm:$0xff]   ;;  %v2112_v53 = vld [vmem:[#allocation2 + $0x10] ss:$8 sps:$4 sm:$0xff]  }
  0x5b   : > { %629 = vmatprep.subr.bf16.mxu0 %v2052_v16  ;;  %906 = vmatprep.subr.bf16.mxu1 %v2073_v23  ;;  %v2117_v54 = vld [vmem:[#allocation2 + $0x24] ss:$8 sps:$4 sm:$0xff]   ;;  %v2115_v55 = vld [vmem:[#allocation2 + $0x20] ss:$8 sps:$4 sm:$0xff]   ;;  %v2120_v56 = vld [vmem:[#allocation2 + $0x34] ss:$8 sps:$4 sm:$0xff]   ;;  %v675_v16 = vlaneseq }
  0x5c   : > { %v2118_v57 = vld [vmem:[#allocation2 + $0x30] ss:$8 sps:$4 sm:$0xff]   ;;  %v2123_v58 = vld [vmem:[#allocation2 + $0x44] ss:$8 sps:$4 sm:$0xff]   ;;  %v2121_v59 = vld [vmem:[#allocation2 + $0x40] ss:$8 sps:$4 sm:$0xff]  }
  0x5d   : > { %v2126_v60 = vld [vmem:[#allocation2 + $0x54] ss:$8 sps:$4 sm:$0xff]   ;;  %v2124_v61 = vld [vmem:[#allocation2 + $0x50] ss:$8 sps:$4 sm:$0xff]   ;;  %v2129_v62 = vld [vmem:[#allocation2 + $0x64] ss:$8 sps:$4 sm:$0xff]  }
  0x5e   : > { %630 = vmatpush1.bf16.msra.mxu0 %v2054_v17  ;;  %907 = vmatpush1.bf16.msra.mxu1 %v2075_v26  ;;  %v2127_v63 = vld [vmem:[#allocation2 + $0x60] ss:$8 sps:$4 sm:$0xff]   ;;  %v2132_v0 = vld [vmem:[#allocation2 + $0x74] ss:$8 sps:$4 sm:$0xff]   ;;  %v2130_v1 = vld [vmem:[#allocation2 + $0x70] ss:$8 sps:$4 sm:$0xff]  }
  0x5f   : > { %631 = vmatprep.subr.bf16.mxu0 %v2055_v20  ;;  %908 = vmatprep.subr.bf16.mxu1 %v2076_v27  ;;  %v2135_v2 = vld [vmem:[#allocation2 + $0x84] ss:$8 sps:$4 sm:$0xff]   ;;  %v2133_v3 = vld [vmem:[#allocation2 + $0x80] ss:$8 sps:$4 sm:$0xff]   ;;  %v2138_v4 = vld [vmem:[#allocation2 + $0x94] ss:$8 sps:$4 sm:$0xff]  }
  0x60   : > { %v2136_v5 = vld [vmem:[#allocation2 + $0x90] ss:$8 sps:$4 sm:$0xff]   ;;  %v2141_v6 = vld [vmem:[#allocation2 + $0xa4] ss:$8 sps:$4 sm:$0xff]   ;;  %v2139_v7 = vld [vmem:[#allocation2 + $0xa0] ss:$8 sps:$4 sm:$0xff]  }
  0x61   : > { %v2144_v8 = vld [vmem:[#allocation2 + $0xb4] ss:$8 sps:$4 sm:$0xff]   ;;  %v2142_v9 = vld [vmem:[#allocation2 + $0xb0] ss:$8 sps:$4 sm:$0xff]   ;;  %v2147_v10 = vld [vmem:[#allocation2 + $0xc4] ss:$8 sps:$4 sm:$0xff]  }
  0x62   : > { %632 = vmatpush1.bf16.msra.mxu0 %v2057_v21  ;;  %909 = vmatpush1.bf16.msra.mxu1 %v2078_v28  ;;  %v2145_v11 = vld [vmem:[#allocation2 + $0xc0] ss:$8 sps:$4 sm:$0xff]   ;;  %v2150_v12 = vld [vmem:[#allocation2 + $0xd4] ss:$8 sps:$4 sm:$0xff]   ;;  %v2148_v13 = vld [vmem:[#allocation2 + $0xd0] ss:$8 sps:$4 sm:$0xff]  }
  0x63   : > { %633 = vmatprep.subr.bf16.mxu0 %v2058_v24  ;;  %910 = vmatprep.subr.bf16.mxu1 %v2079_v30  ;;  %v2266_v14 = vmov 1966171168   ;;  %v676_v18 = vshrl.u32 %v675_v16, 7  ;;  %v2172_v16 = vld [vmem:[#allocation4 + $0x38] sm:$0xff]   ;;  %vm1671_vm2 = vcmask 261120   ;;  %s1802_s29 = sshll.u32 %s2723_s21, 3 }
  0x64   : > { %v673_v15 = vunpack.c.l.s4 %v2266_v14  ;;  %v1819_v19 = vld.sshfl [vmem:[%s2694_s2] sm:$0x11 pattern:$0x75316420]  ;;  %v2170_v14 = vld [vmem:[#allocation4 + $0x30] sm:$0xff]   ;;  %s2720_s20 = sld [smem:[#allocation9_spill]] }
  0x65   : > { %v671_v21 = vcombine.high %v1819_v19, %v1819_v19  ;;  %vm1715_vm3 = vcmask 31744  }
  0x66   : > { %634 = vmatpush1.bf16.msra.mxu0 %v2060_v25  ;;  %911 = vmatpush1.bf16.msra.mxu1 %v2081_v31  ;;  %v674_v17 = vunpack.c.0.s8 %v673_v15  ;;  %v2590_v25 = vsub.s32 0, %v676_v18  ;;  %v2171_v15 = vld [vmem:[#allocation4 + $0x78] sm:$0xff]  }
  0x67   : > { %912 = vmatprep.subr.bf16.mxu1 %v2082_v32  ;;  %1177 = vmatprep.subr.bf16.mxu0 %v2111_v51  ;;  %v2163_v51 = vld [vmem:[#allocation4 + $0x58] sm:$0xff]  }
  0x68   : > { %v2586_v20 = vsub.s32 %v674_v17, %v676_v18  ;;  %v2173_v17 = vld [vmem:[%s2701_s9] sm:$0xff]   ;;  %v2267_v18 = vmov 0.0  }
  0x69   : > { %652 = vmatmul.mubr.bf16.vlgmr.msra.gmra.mrb[0].mxu0 %v522_v29 }
  0x6a   : > { %913 = vmatpush1.bf16.msra.mxu1 %v2084_v33  ;;  %1178 = vmatpush1.bf16.msra.mxu0 %v2109_v50  ;;  %v678_v22 = vrot.slane %v1819_v19, %v2586_v20  ;;  %v685_v23 = vrot.slane %v671_v21, %v2586_v20  ;;  %v2162_v50 = vld [vmem:[#allocation4 + $0x10] sm:$0xff]   ;;  %v2174_v19 = vld [vmem:[%s2701_s9 + $0x8] sm:$0xff]   ;;  %s519_s15 = scalar_lea.vmem %s2720_s20, %s1802_s29 }
  0x6b   : > { %914 = vmatprep.subr.bf16.mxu1 %v2085_v34  ;;  %1179 = vmatprep.subr.bf16.mxu0 %v2114_v52  ;;  %v2164_v52 = vld [vmem:[#allocation4 + $0x18] sm:$0xff]   ;;  %v2175_v21 = vld [vmem:[%s2701_s9 + $0x10] sm:$0xff]  }
  0x6c   : > { %v687_v24 = vpack.i.b16 %v678_v22, %v678_v22  ;;  %v694_v26 = vpack.i.b16 %v685_v23, %v685_v23  ;;  %v2176_v22 = vld [vmem:[%s2701_s9 + $0x18] sm:$0xff]   ;;  %v2177_v23 = vld [vmem:[%s2701_s9 + $0x20] sm:$0xff]  }
  0x6e   : > { %915 = vmatpush1.bf16.msra.mxu1 %v2087_v35  ;;  %1180 = vmatpush1.bf16.msra.mxu0 %v2112_v53  ;;  %v692_v27 = vrot.slane %v687_v24, %v2590_v25  ;;  %v699_v29 = vrot.slane %v694_v26, %v2590_v25  ;;  %v2165_v53 = vld [vmem:[#allocation4 + $0x60] sm:$0xff]  }
  0x6f   : > { %916 = vmatprep.subr.bf16.mxu1 %v2088_v36  ;;  %1181 = vmatprep.subr.bf16.mxu0 %v2117_v54  ;;  %v2166_v54 = vld [vmem:[#allocation4 + $0x20] sm:$0xff]  }
  0x70   : > { %v1885_v24 = vld.sshfl [vmem:[%s2698_s6] sm:$0x11 pattern:$0x75316420] }
  0x71   : > { %v1229_v26 = vcombine.high %v1885_v24, %v1885_v24 }
  0x72   : > { %917 = vmatpush1.bf16.msra.mxu1 %v2090_v37  ;;  %1182 = vmatpush1.bf16.msra.mxu0 %v2115_v55  ;;  %v2167_v55 = vld [vmem:[#allocation4 + $0x68] sm:$0xff]  }
  0x73   : > { %918 = vmatprep.subr.bf16.mxu1 %v2091_v38  ;;  %1183 = vmatprep.subr.bf16.mxu0 %v2120_v56  ;;  %v1852_v56 = vld.sshfl [vmem:[%s2696_s4] sm:$0x11 pattern:$0x75316420] }
  0x76   : > { %919 = vmatpush1.bf16.msra.mxu1 %v2093_v39  ;;  %1184 = vmatpush1.bf16.msra.mxu0 %v2118_v57  ;;  %v950_v57 = vcombine.high %v1852_v56, %v1852_v56 }
  0x77   : > { %920 = vmatprep.subr.bf16.mxu1 %v2094_v40  ;;  %1185 = vmatprep.subr.bf16.mxu0 %v2123_v58  ;;  %v957_v58 = vrot.slane %v1852_v56, %v2586_v20 }
  0x7a   : > { %921 = vmatpush1.bf16.msra.mxu1 %v2096_v41  ;;  %1186 = vmatpush1.bf16.msra.mxu0 %v2121_v59  ;;  %v2153_v41 = vld [vmem:[#allocation2 + $0xe4] ss:$8 sps:$4 sm:$0xff]   ;;  %v964_v59 = vrot.slane %v950_v57, %v2586_v20 }
  0x7b   : > { %922 = vmatprep.subr.bf16.mxu1 %v2097_v42  ;;  %1187 = vmatprep.subr.bf16.mxu0 %v2126_v60  ;;  %v2151_v42 = vld [vmem:[#allocation2 + $0xe0] ss:$8 sps:$4 sm:$0xff]   ;;  %v966_v60 = vpack.i.b16 %v957_v58, %v957_v58 }
  0x7e   : > { %923 = vmatpush1.bf16.msra.mxu1 %v2099_v43  ;;  %1188 = vmatpush1.bf16.msra.mxu0 %v2124_v61  ;;  %v2156_v43 = vld [vmem:[#allocation2 + $0xf4] ss:$8 sps:$4 sm:$0xff]   ;;  %v973_v61 = vpack.i.b16 %v964_v59, %v964_v59 }
  0x7f   : > { %924 = vmatprep.subr.bf16.mxu1 %v2100_v44  ;;  %1189 = vmatprep.subr.bf16.mxu0 %v2129_v62  ;;  %v2154_v44 = vld [vmem:[#allocation2 + $0xf0] ss:$8 sps:$4 sm:$0xff]   ;;  %v971_v62 = vrot.slane %v966_v60, %v2590_v25 }
  0x82   : > { %925 = vmatpush1.bf16.msra.mxu1 %v2102_v45  ;;  %1190 = vmatpush1.bf16.msra.mxu0 %v2127_v63  ;;  %v2157_v45 = vld [vmem:[#allocation4 + $0x40] sm:$0xff]  }
  0x83   : > { %926 = vmatprep.subr.bf16.mxu1 %v2103_v46  ;;  %1191 = vmatprep.subr.bf16.mxu0 %v2132_v0  ;;  %v2158_v46 = vld [vmem:[#allocation4] sm:$0xff]   ;;  %v978_v0 = vrot.slane %v973_v61, %v2590_v25  ;;  %v2183_v61 = vld [vmem:[%s2703_s11 + $0x10] sm:$0xff]  }
  0x86   : > { %927 = vmatpush1.bf16.msra.mxu1 %v2105_v47  ;;  %1192 = vmatpush1.bf16.msra.mxu0 %v2130_v1  ;;  %v2159_v47 = vld [vmem:[#allocation4 + $0x48] sm:$0xff]  }
  0x87   : > { %928 = vmatprep.subr.bf16.mxu1 %v2106_v48  ;;  %1193 = vmatprep.subr.bf16.mxu0 %v2135_v2  ;;  %v2160_v48 = vld [vmem:[#allocation4 + $0x8] sm:$0xff]  }
  0x8a   : > { %929 = vmatpush1.bf16.msra.mxu1 %v2108_v49  ;;  %1194 = vmatpush1.bf16.msra.mxu0 %v2133_v3  ;;  %v2161_v49 = vld [vmem:[#allocation4 + $0x50] sm:$0xff]  }
  0x8b   : > { %1195 = vmatprep.subr.bf16.mxu0 %v2138_v4  ;;  %1921 = vmatprep.subr.bf16.mxu1 %v2157_v45  ;;  %v2179_v45 = vld [vmem:[%s2701_s9 + $0x30] sm:$0xff]  }
  0x8e   : > { %1196 = vmatpush1.bf16.msra.mxu0 %v2136_v5 }
  0x8f   : > { %1197 = vmatprep.subr.bf16.mxu0 %v2141_v6 }
  0x92   : > { %1198 = vmatpush1.bf16.msra.mxu0 %v2139_v7 }
  0x93   : > { %1199 = vmatprep.subr.bf16.mxu0 %v2144_v8 }
  0x96   : > { %1200 = vmatpush1.bf16.msra.mxu0 %v2142_v9 }
  0x97   : > { %1201 = vmatprep.subr.bf16.mxu0 %v2147_v10 }
  0x9a   : > { %1202 = vmatpush1.bf16.msra.mxu0 %v2145_v11 }
  0x9b   : > { %1203 = vmatprep.subr.bf16.mxu0 %v2150_v12  ;;  %v2168_v12 = vld [vmem:[#allocation4 + $0x28] sm:$0xff]  }
  0x9e   : > { %1204 = vmatpush1.bf16.msra.mxu0 %v2148_v13  ;;  %v2169_v13 = vld [vmem:[#allocation4 + $0x70] sm:$0xff]  }
  0x9f   : > { %1205 = vmatprep.subr.bf16.mxu0 %v2153_v41 }
  0xa2   : > { %1206 = vmatpush1.bf16.msra.mxu0 %v2151_v42 }
  0xa3   : > { %1207 = vmatprep.subr.bf16.mxu0 %v2156_v43 }
  0xa6   : > { %1208 = vmatpush1.bf16.msra.mxu0 %v2154_v44 }
  0xa7   : > { %1960 = vmatprep.subr.bf16.mxu0 %v2267_v18 }
 0x13c   : > { %v653_v28 = vpop.f32.mrb[0].mxu0 }
 0x13d   : > { %v660_v30 = vpack.c.bf16 %v653_v28, %v653_v28  ;;  %v655_v31 = vpop.f32.mrb[1].mxu0  ;;  %v1243_v28 = vrot.slane %v1229_v26, %v2586_v20 }
 0x13e   : > { %v661_v32 = vpack.c.bf16 %v655_v31, %v655_v31  ;;  %v657_v33 = vpop.f32.mrb[2].mxu0 }
 0x13f   : > { %v700_v34 = vadd.bf16 %v692_v27, %v660_v30  ;;  %v658_v35 = vpop.f32.mrb[3].mxu0  ;;  %v1236_v27 = vrot.slane %v1885_v24, %v2586_v20  ;;  %v1252_v30 = vpack.i.b16 %v1243_v28, %v1243_v28  ;;  %v2178_v20 = vld [vmem:[%s2701_s9 + $0x28] sm:$0xff]   ;;  %v1915_v24 = vld [vmem:[%s2706_s14] ss:$0 sm:$0xff] }
 0x140   : > { %v701_v36 = vadd.bf16 %v699_v29, %v661_v32 }
 0x141   : > { %v702_v37 = vmul.bf16 1017396388, %v700_v34  ;;  %v1245_v29 = vpack.i.b16 %v1236_v27, %v1236_v27  ;;  %v1257_v33 = vrot.slane %v1252_v30, %v2590_v25 }
 0x142   : > { %v703_v38 = vmul.bf16 1017396388, %v701_v36 }
 0x143   : > { %v704_v40 = vmax.bf16 %v702_v37, %v700_v34  ;;  %v1250_v31 = vrot.slane %v1245_v29, %v2590_v25 }
 0x144   : > { %v705_v39 = vmax.bf16 %v703_v38, %v701_v36 }
 0x146   : > { %930 = vmatprep.mubr.bf16.mxu1 %v705_v39 }
 0x147   : > { %931 = vmatmul.mubr.bf16.vlgmr.msra.gmra.mrb[0].mxu1 %v704_v40 }
 0x148   : > { %1922 = vmatpush3.bf16.msra.mxu1 %v2158_v46  ;;  %v2180_v46 = vld [vmem:[%s2701_s9 + $0x38] sm:$0xff]  }
 0x149   : > { %1923 = vmatprep.subr.bf16.mxu1 %v2159_v47  ;;  %v2181_v47 = vld [vmem:[%s2703_s11] sm:$0xff]  }
 0x14c   : > { %1924 = vmatpush3.bf16.msra.mxu1 %v2160_v48  ;;  %v2182_v48 = vld [vmem:[%s2703_s11 + $0x8] sm:$0xff]  }
 0x14d   : > { %1925 = vmatprep.subr.bf16.mxu1 %v2161_v49  ;;  %v1433_v49 = vld [vmem:[%s2700_s8] sm:$0x1] }
 0x150   : > { %1926 = vmatpush3.bf16.msra.mxu1 %v2162_v50  ;;  %v1435_v50 = vpack.i.b16 %v1433_v49, %v1433_v49 }
 0x151   : > { %1927 = vmatprep.subr.bf16.mxu1 %v2163_v51 }
 0x154   : > { %1928 = vmatpush3.bf16.msra.mxu1 %v2164_v52 }
 0x155   : > { %1929 = vmatprep.subr.bf16.mxu1 %v2165_v53 }
 0x158   : > { %1930 = vmatpush3.bf16.msra.mxu1 %v2166_v54  ;;  %v1440_v54 = vrot.slane %v1435_v50, %v2590_v25 }
 0x159   : > { %1931 = vmatprep.subr.bf16.mxu1 %v2167_v55 }
 0x15c   : > { %1932 = vmatpush3.bf16.msra.mxu1 %v2168_v12  ;;  %v1637_v12 = vld [vmem:[%s2704_s12] sm:$0x1] }
 0x15d   : > { %1933 = vmatprep.subr.bf16.mxu1 %v2169_v13  ;;  %v1639_v13 = vpack.i.b16 %v1637_v12, %v1637_v12 }
 0x160   : > { %1934 = vmatpush3.bf16.msra.mxu1 %v2170_v14  ;;  %v1644_v14 = vrot.slane %v1639_v13, %v2590_v25 }
 0x161   : > { %1935 = vmatprep.subr.bf16.mxu1 %v2171_v15 }
 0x164   : > { %1936 = vmatpush3.bf16.msra.mxu1 %v2172_v16 }
 0x165   : > { %1980 = vmatprep.subr.bf16.mxu1 %v2267_v18 }
 0x21a   : > { %v932_v63 = vpop.f32.mrb[0].mxu1 }
 0x21b   : > { %v939_v1 = vpack.c.bf16 %v932_v63, %v932_v63  ;;  %v934_v2 = vpop.f32.mrb[1].mxu1  ;;  %v1549_v63 = vld [vmem:[%s2702_s10] sm:$0x1] }
 0x21c   : > { %v940_v3 = vpack.c.bf16 %v934_v2, %v934_v2  ;;  %v936_v4 = vpop.f32.mrb[2].mxu1 }
 0x21d   : > { %v979_v5 = vadd.bf16 %v971_v62, %v939_v1  ;;  %v937_v6 = vpop.f32.mrb[3].mxu1  ;;  %v2184_v62 = vld [vmem:[%s2703_s11 + $0x18] sm:$0xff]  }
 0x21e   : > { %v980_v7 = vadd.bf16 %v978_v0, %v940_v3  ;;  %v1551_v0 = vpack.i.b16 %v1549_v63, %v1549_v63 }
 0x21f   : > { %v981_v8 = vmul.bf16 1017396388, %v979_v5 }
 0x220   : > { %v982_v9 = vmul.bf16 1017396388, %v980_v7  ;;  %v1556_v1 = vrot.slane %v1551_v0, %v2590_v25 }
 0x221   : > { %v983_v11 = vmax.bf16 %v981_v8, %v979_v5 }
 0x222   : > { %v984_v10 = vmax.bf16 %v982_v9, %v980_v7 }
 0x224   : > { %1209 = vmatprep.mubr.bf16.mxu0 %v984_v10  ;;  %v2185_v10 = vld [vmem:[%s2705_s13] sm:$0xff]  }
 0x225   : > { %1210 = vmatmul.mubr.bf16.vlgmr.msra.gmra.mrb[4].mxu0 %v983_v11  ;;  %v2186_v11 = vld [vmem:[%s2705_s13 + $0x8] sm:$0xff]  }
 0x226   : > { %1961 = vmatpush3.bf16.msra.mxu0 %v2173_v17  ;;  %1976 = vmatprep.mubr.msk.bf16.mxu0 %vm2268_vm0, %v2267_v18 }
 0x227   : > { %1962 = vmatprep.subr.bf16.mxu0 %v2267_v18 }
 0x22a   : > { %1963 = vmatpush3.bf16.msra.mxu0 %v2174_v19 }
 0x22b   : > { %1964 = vmatprep.subr.bf16.mxu0 %v2267_v18 }
 0x22e   : > { %1965 = vmatpush3.bf16.msra.mxu0 %v2175_v21 }
 0x22f   : > { %1966 = vmatprep.subr.bf16.mxu0 %v2267_v18 }
 0x232   : > { %1967 = vmatpush3.bf16.msra.mxu0 %v2176_v22 }
 0x233   : > { %1968 = vmatprep.subr.bf16.mxu0 %v2267_v18 }
 0x236   : > { %1969 = vmatpush3.bf16.msra.mxu0 %v2177_v23 }
 0x237   : > { %1970 = vmatprep.subr.bf16.mxu0 %v2267_v18 }
 0x23a   : > { %1971 = vmatpush3.bf16.msra.mxu0 %v2178_v20 }
 0x23b   : > { %1972 = vmatprep.subr.bf16.mxu0 %v2267_v18 }
 0x23e   : > { %1973 = vmatpush3.bf16.msra.mxu0 %v2179_v45 }
 0x23f   : > { %1974 = vmatprep.subr.bf16.mxu0 %v2267_v18 }
 0x242   : > { %1975 = vmatpush3.bf16.msra.mxu0 %v2180_v46 }
 0x2f8   : > { %v1211_v32 = vpop.f32.mrb[4].mxu0 }
 0x2f9   : > { %v1218_v34 = vpack.c.bf16 %v1211_v32, %v1211_v32  ;;  %v1213_v35 = vpop.f32.mrb[5].mxu0 }
 0x2fa   : > { %v1219_v36 = vpack.c.bf16 %v1213_v35, %v1213_v35  ;;  %v1215_v37 = vpop.f32.mrb[6].mxu0 }
 0x2fb   : > { %v1258_v38 = vadd.bf16 %v1250_v31, %v1218_v34  ;;  %v1216_v39 = vpop.f32.mrb[7].mxu0 }
 0x2fc   : > { %v1259_v40 = vadd.bf16 %v1257_v33, %v1219_v36 }
 0x2fd   : > { %v1260_v41 = vmul.bf16 1017396388, %v1258_v38 }
 0x2fe   : > { %v1261_v42 = vmul.bf16 1017396388, %v1259_v40 }
 0x2ff   : > { %v1262_v44 = vmax.bf16 %v1260_v41, %v1258_v38 }
 0x300   : > { %v1263_v43 = vmax.bf16 %v1261_v42, %v1259_v40 }
 0x302   : > { %1424 = vmatprep.mubr.bf16.mxu1 %v1263_v43 }
 0x303   : > { %1425 = vmatmul.mubr.bf16.vlgmr.msra.gmra.mrb[4].mxu1 %v1262_v44 }
 0x304   : > { %1988 = vmatprep.mubr.msk.bf16.mxu1 %vm2268_vm0, %v2267_v18  ;;  %1981 = vmatpush3.bf16.msra.mxu1 %v2181_v47 }
 0x305   : > { %1982 = vmatprep.subr.bf16.mxu1 %v2267_v18 }
 0x308   : > { %1983 = vmatpush3.bf16.msra.mxu1 %v2182_v48 }
 0x309   : > { %1984 = vmatprep.subr.bf16.mxu1 %v2267_v18 }
 0x30c   : > { %1985 = vmatpush3.bf16.msra.mxu1 %v2183_v61 }
 0x30d   : > { %1986 = vmatprep.subr.bf16.mxu1 %v2267_v18 }
 0x310   : > { %1987 = vmatpush3.bf16.msra.mxu1 %v2184_v62 }
 0x311   : > { %1992 = vmatprep.subr.bf16.mxu1 %v2267_v18 }
 0x3d6   : > { %v1937_v51 = vpop.f32.mrb[4].mxu1 }
 0x3d7   : > { %v1938_v52 = vpop.f32.mrb[5].mxu1 }
 0x3d8   : > { %v1939_v53 = vadd.f32 %v1938_v52, %v1937_v51  ;;  %v1940_v55 = vpop.f32.mrb[6].mxu1 }
 0x3d9   : > { %v1941_v56 = vpop.f32.mrb[7].mxu1 }
 0x3da   : > { %v1432_v57 = vpack.c.bf16 %v1939_v53, %v1939_v53 }
 0x3dc   : > { %v1441_v58 = vadd.bf16 %v1440_v54, %v1432_v57 }
 0x3de   : > { %v1442_v59 = vmul.bf16 1017396388, %v1441_v58 }
 0x3e0   : > { %v1443_v60 = vmax.bf16 %v1442_v59, %v1441_v58 }
 0x3e2   : > { %1977 = vmatmul.mubr.bf16.vlgmr.msra.gmra.mrb[8].mxu0 %v1443_v60 }
 0x4b5   : > { %v1542_v2 = vpop.f32.mrb[8].mxu0 }
 0x4b6   : > { %v1548_v3 = vpack.c.bf16 %v1542_v2, %v1542_v2  ;;  %v1978_v4 = vpop.f32.mrb[9].mxu0 }
 0x4b7   : > { %v1545_v5 = vpop.f32.mrb[10].mxu0 }
 0x4b8   : > { %v1557_v6 = vadd.bf16 %v1556_v1, %v1548_v3  ;;  %v1979_v7 = vpop.f32.mrb[11].mxu0 }
 0x4ba   : > { %v1558_v8 = vmul.bf16 1017396388, %v1557_v6 }
 0x4bc   : > { %v1559_v9 = vmax.bf16 %v1558_v8, %v1557_v6 }
 0x4be   : > { %1989 = vmatmul.mubr.msk.bf16.vlgmr.msra.gmra.mrb[8].mxu1 %vm1592_vm1, %v1559_v9 }
 0x4bf   : > { %1996 = vmatprep.mubr.msk.bf16.mxu1 %vm2268_vm0, %v2267_v18  ;;  %1993 = vmatpush3.bf16.msra.mxu1 %v2185_v10 }
 0x4c0   : > { %1994 = vmatprep.subr.bf16.mxu1 %v2267_v18 }
 0x4c3   : > { %1995 = vmatpush3.bf16.msra.mxu1 %v2186_v11 }
 0x591   : > { %v1630_v15 = vpop.f32.mrb[8].mxu1 }
 0x592   : > { %v1636_v16 = vpack.c.bf16 %v1630_v15, %v1630_v15  ;;  %v1990_v17 = vpop.f32.mrb[9].mxu1 }
 0x593   : > { %v1633_v19 = vpop.f32.mrb[10].mxu1 }
 0x594   : > { %v1645_v21 = vadd.bf16 %v1644_v14, %v1636_v16  ;;  %v1991_v22 = vpop.f32.mrb[11].mxu1 }
 0x596   : > { %v1646_v18 = vmul.bf16 1017396388, %v1645_v21 }
 0x598   : > { %v1647_v23 = vmax.bf16 %v1646_v18, %v1645_v21 }
 0x59a   : > { %1997 = vmatmul.mubr.msk.bf16.vlgmr.msra.gmra.mrb[12].mxu1 %vm1671_vm2, %v1647_v23 }
 0x66d   : > { %v1709_v25 = vpop.f32.mrb[12].mxu1 }
 0x66e   : > { %v1710_v26 = vadd.f32 %v1915_v24, %v1709_v25  ;;  %v1998_v27 = vpop.f32.mrb[13].mxu1 }
 0x66f   : > { %v1712_v28 = vpop.f32.mrb[14].mxu1 }
 0x670   : > { %1716 = vst.msk [vmem:[%s519_s15] sm:$0xff] %vm1715_vm3, %v1710_v26  ;;  %v1999_v29 = vpop.f32.mrb[15].mxu1 }
 0x671 PF: > { %s2721_s18 = sld [smem:[#allocation8_spill]] }
 0x677   : > { %s27_s18 = sadd.s32 1, %s2721_s18  }
 0x678   : > { %p24_p9 = scmp.ge.s32.totalorder %s27_s18, 4  }
 0x67a   :  { %26 = sbr.rel (!%p24_p9) target bundleno = 4 (0x4), region = 119 }
 0x681   :  { %1736 = vsyncpa [#allocation3], 1 }
 0x682   :  { %1738 = vsyncpa [#allocation3 + $0x1], 1 }
 0x683   :  { %1739 = vsyncpa [#allocation5], 1 }

</bundles_post_ra>
